<compile_context>
chip_gen: v5e
topology: v5e:2x2
jax: 0.10.0
libtpu: 0.0.40
codegen_flags: <defaults>
</compile_context>

<pallas_src>
import jax
import jax.numpy as jnp
from jax.experimental import pallas as pl
from jax.experimental.pallas import tpu as pltpu


# ---------------------------------------------------------------------------
# Packed-parameter slab layout: one (P_ROWS, 128) bfloat16 array.
#   rows   0..15  : W1  (9,128)  padded to (16,128)   (rows  9..15 zero)
#   rows  16..143 : W2  (128,64) padded to (128,128)  (cols 64..127 zero)
#   rows 144..271 : W3  (64,4)   padded to (128,128)  (rows 64.., cols 4.. zero)
#   row  272      : b1  (128,)
#   row  273      : b2  (64,)  padded to 128 (cols 64.. zero)
#   row  274      : b3  (4,)   padded to 128 (cols  4.. zero)
#   rows 275..287 : zero padding (sublane alignment to a multiple of 16 for bf16)
# ---------------------------------------------------------------------------
P_W1, P_W2, P_W3, P_B = 0, 16, 144, 272
P_ROWS = 288


def munet_kernel(x_ref, p_ref, o_ref):
    x = x_ref[...]                                   # (TB, 16) bf16, cols 9..15 zero

    w1 = p_ref[P_W1:P_W1 + 16, :]                    # (16, 128)  bf16 (rows 9..15 zero)
    w2 = p_ref[P_W2:P_W2 + 128, :]                   # (128, 128) bf16 (cols 64.. zero)
    w3 = p_ref[P_W3:P_W3 + 128, :]                   # (128, 128) bf16 (cols 4..  zero)
    # Biases: element-wise work stays f32 (v5e VPU/EUP have no bf16 path).
    b1 = p_ref[P_B + 0:P_B + 1, :].astype(jnp.float32)   # (1, 128)
    b2 = p_ref[P_B + 1:P_B + 2, :].astype(jnp.float32)   # (1, 128)
    b3 = p_ref[P_B + 2:P_B + 3, :].astype(jnp.float32)   # (1, 128)

    # bf16 operands on the MXU, f32 accumulation.
    h1 = jnp.dot(x, w1, preferred_element_type=jnp.float32) + b1
    h1 = jnp.maximum(h1, 0.0)                        # (TB, 128) f32

    h2 = jnp.dot(h1.astype(jnp.bfloat16), w2,
                 preferred_element_type=jnp.float32) + b2
    h2 = jnp.maximum(h2, 0.0)                        # (TB, 128) f32, cols 64.. == 0

    mu = jnp.dot(h2.astype(jnp.bfloat16), w3,
                 preferred_element_type=jnp.float32) + b3   # (TB, 128), cols 4.. == 0
    # Narrow store: only the 4 real action columns go to HBM.
    o_ref[...] = jnp.tanh(mu[:, :4]).astype(o_ref.dtype)    # (TB, 4)


def pack_munet_params(params):
    """Pack W1,b1,W2,b2,W3,b3 (W*: (in,out) layout) into one (288,128) bf16 slab."""
    slab = jnp.zeros((P_ROWS, 128), jnp.float32)
    slab = slab.at[P_W1:P_W1 + 9, :].set(params["W1"])          # (9,128)
    slab = slab.at[P_W2:P_W2 + 128, 0:64].set(params["W2"])     # (128,64)
    slab = slab.at[P_W3:P_W3 + 64, 0:4].set(params["W3"])       # (64,4)
    slab = slab.at[P_B + 0, :].set(params["b1"])
    slab = slab.at[P_B + 1, 0:64].set(params["b2"])
    slab = slab.at[P_B + 2, 0:4].set(params["b3"])
    return slab.astype(jnp.bfloat16)


def _round_up(n, m):
    return ((n + m - 1) // m) * m


def _choose_tb(B, tb):
    # Multiples of 16 (bf16 sublane packing).  For B > 512 force >=2 grid
    # steps so dimension_semantics=("parallel",) can shard the batch across
    # v7x's two TensorCores (no-op on single-TC v5e/v6e).
    if B <= 512:
        return max(16, _round_up(B, 16))
    return min(tb, _round_up(pl.cdiv(B, 2), 16))


def munet_forward(x, packed_params, *, tb=2048):
    """x: (B, 9) float32.  packed_params: (288, 128) bf16 slab from pack_munet_params."""
    B = x.shape[0]
    TB = _choose_tb(B, tb)
    B_pad = pl.cdiv(B, TB) * TB

    # Pad batch to a tile multiple and features 9 -> 16 (sublane-aligned K for
    # the first matmul; padded columns are zero and W1 rows 9..15 are zero).
    x_p = jnp.pad(x, ((0, B_pad - B), (0, 16 - 9))).astype(jnp.bfloat16)

    n_tiles = B_pad // TB
    flops = 2 * B_pad * (16 * 128 + 128 * 128 + 128 * 128)
    bytes_accessed = (B_pad * 16 * 2) + (P_ROWS * 128 * 2) + (B_pad * 4 * 4)

    out = pl.pallas_call(
        munet_kernel,
        out_shape=jax.ShapeDtypeStruct((B_pad, 4), jnp.float32),
        grid=(n_tiles,),
        in_specs=[
            # x: tiled over batch, lane-padded in VMEM to TB*128*2 B per buffer.
            pl.BlockSpec((TB, 16), lambda i: (i, 0)),
            # packed params: constant index_map -> fetched once, VMEM-resident.
            pl.BlockSpec((P_ROWS, 128), lambda i: (0, 0)),
        ],
        # Last block dim (4) equals the full array dim -> legal narrow block.
        out_specs=pl.BlockSpec((TB, 4), lambda i: (i, 0)),
        compiler_params=pltpu.CompilerParams(
            dimension_semantics=("parallel",),       # megacore split on v7x
            vmem_limit_bytes=32 * 1024 * 1024,       # explicit budget (~7 MB used @ TB=2048)
        ),
        cost_estimate=pl.CostEstimate(
            flops=flops,
            transcendentals=B_pad * 4,               # tanh on the real outputs
            bytes_accessed=bytes_accessed,
        ),
    )(x_p, packed_params)

    return out[:B, :]


def init_munet_params(key):
    """Deterministic init matching nn.Linear's default U(-1/sqrt(fan_in), +)."""
    dims = [(9, 128), (128, 64), (64, 4)]
    names = [("W1", "b1"), ("W2", "b2"), ("W3", "b3")]
    params = {}
    for (fan_in, fan_out), (wn, bn) in zip(dims, names):
        key, kw, kb = jax.random.split(key, 3)
        bound = 1.0 / (fan_in ** 0.5)
        params[wn] = jax.random.uniform(
            kw, (fan_in, fan_out), jnp.float32, minval=-bound, maxval=bound)
        params[bn] = jax.random.uniform(
            kb, (fan_out,), jnp.float32, minval=-bound, maxval=bound)
    return params


def munet_reference(x, params):
    h1 = jnp.maximum(x @ params["W1"] + params["b1"], 0.0)
    h2 = jnp.maximum(h1 @ params["W2"] + params["b2"], 0.0)
    return jnp.tanh(h2 @ params["W3"] + params["b3"])


if __name__ == "__main__":
    key = jax.random.PRNGKey(0)
    kx, kp, kx2 = jax.random.split(key, 3)

    params = init_munet_params(kp)
    packed = pack_munet_params(params)  # one-time packing (amortized across calls)

    # Small, non-multiple-of-tile batch: exercises the remainder-padding path.
    B = 50
    x = jax.random.normal(kx, (B, 9), jnp.float32)
    mu = jax.block_until_ready(munet_forward(x, packed))
    ref = munet_reference(x, params)
    assert mu.shape == (B, 4), mu.shape
    # bf16 matmul operands -> looser tolerance vs the f32 reference.
    assert jnp.allclose(mu, ref, atol=3e-2, rtol=0.0), "mismatch vs reference (small B)"

    # Mid-size batch: exercises the multi-step grid (>=2 tiles, megacore path).
    B2 = 600
    x2 = jax.random.normal(kx2, (B2, 9), jnp.float32)
    mu2 = jax.block_until_ready(munet_forward(x2, packed))
    ref2 = munet_reference(x2, params)
    assert mu2.shape == (B2, 4), mu2.shape
    assert jnp.allclose(mu2, ref2, atol=3e-2, rtol=0.0), "mismatch vs reference (mid B)"

    print("KERNEL_OK")
</pallas_src>

<mosaic_0001>
module attributes {stable_mosaic.version = 11 : i64} {
  func.func @munet_kernel(%arg0: i32, %arg1: memref<64x16xbf16, #tpu.memory_space<vmem>>, %arg2: memref<288x128xbf16, #tpu.memory_space<vmem>>, %arg3: memref<64x4xf32, #tpu.memory_space<vmem>>) attributes {dimension_semantics = [#tpu.dimension_semantics<parallel>], iteration_bounds = array<i64: 1>, scalar_prefetch = 0 : i64, scratch_operands = 0 : i64, tpu.core_type = #tpu.core_type<tc>, window_params = [{transform_indices = @transform_0, window_bounds = array<i64: 64, 16>}, {pipeline_mode = #tpu.pipeline_mode<synchronous>, transform_indices = @transform_1, window_bounds = array<i64: 288, 128>}, {transform_indices = @transform_2, window_bounds = array<i64: 64, 4>}]} {
    %c0 = arith.constant 0 : index
    %c0_0 = arith.constant 0 : index
    %0 = vector.load %arg1[%c0, %c0_0] : memref<64x16xbf16, #tpu.memory_space<vmem>>, vector<64x16xbf16>
    %c0_1 = arith.constant 0 : index
    %c0_2 = arith.constant 0 : index
    %1 = vector.load %arg2[%c0_1, %c0_2] : memref<288x128xbf16, #tpu.memory_space<vmem>>, vector<16x128xbf16>
    %c16 = arith.constant 16 : index
    %c0_3 = arith.constant 0 : index
    %2 = vector.load %arg2[%c16, %c0_3] : memref<288x128xbf16, #tpu.memory_space<vmem>>, vector<128x128xbf16>
    %c144 = arith.constant 144 : index
    %c0_4 = arith.constant 0 : index
    %3 = vector.load %arg2[%c144, %c0_4] : memref<288x128xbf16, #tpu.memory_space<vmem>>, vector<128x128xbf16>
    %c272 = arith.constant 272 : index
    %c0_5 = arith.constant 0 : index
    %4 = vector.load %arg2[%c272, %c0_5] : memref<288x128xbf16, #tpu.memory_space<vmem>>, vector<1x128xbf16>
    %5 = arith.extf %4 : vector<1x128xbf16> to vector<1x128xf32>
    %c273 = arith.constant 273 : index
    %c0_6 = arith.constant 0 : index
    %6 = vector.load %arg2[%c273, %c0_6] : memref<288x128xbf16, #tpu.memory_space<vmem>>, vector<1x128xbf16>
    %7 = arith.extf %6 : vector<1x128xbf16> to vector<1x128xf32>
    %c274 = arith.constant 274 : index
    %c0_7 = arith.constant 0 : index
    %8 = vector.load %arg2[%c274, %c0_7] : memref<288x128xbf16, #tpu.memory_space<vmem>>, vector<1x128xbf16>
    %9 = arith.extf %8 : vector<1x128xbf16> to vector<1x128xf32>
    %cst = arith.constant dense<0.000000e+00> : vector<64x128xf32>
    %10 = tpu.matmul %0, %1, %cst {dimension_numbers = #tpu.dot_dimension_numbers<[1], [0], [0], [1], [0, 0, 1, 1], [], []>} : vector<64x16xbf16>, vector<16x128xbf16>, vector<64x128xf32> -> vector<64x128xf32>
    %11 = vector.broadcast %5 : vector<1x128xf32> to vector<64x128xf32>
    %12 = arith.addf %10, %11 : vector<64x128xf32>
    %cst_8 = arith.constant 0.000000e+00 : f32
    %13 = vector.broadcast %cst_8 : f32 to vector<64x128xf32>
    %14 = arith.maximumf %12, %13 : vector<64x128xf32>
    %15 = arith.truncf %14 : vector<64x128xf32> to vector<64x128xbf16>
    %cst_9 = arith.constant dense<0.000000e+00> : vector<64x128xf32>
    %16 = tpu.matmul %15, %2, %cst_9 {dimension_numbers = #tpu.dot_dimension_numbers<[1], [0], [0], [1], [0, 0, 1, 1], [], []>} : vector<64x128xbf16>, vector<128x128xbf16>, vector<64x128xf32> -> vector<64x128xf32>
    %17 = vector.broadcast %7 : vector<1x128xf32> to vector<64x128xf32>
    %18 = arith.addf %16, %17 : vector<64x128xf32>
    %cst_10 = arith.constant 0.000000e+00 : f32
    %19 = vector.broadcast %cst_10 : f32 to vector<64x128xf32>
    %20 = arith.maximumf %18, %19 : vector<64x128xf32>
    %21 = arith.truncf %20 : vector<64x128xf32> to vector<64x128xbf16>
    %cst_11 = arith.constant dense<0.000000e+00> : vector<64x128xf32>
    %22 = tpu.matmul %21, %3, %cst_11 {dimension_numbers = #tpu.dot_dimension_numbers<[1], [0], [0], [1], [0, 0, 1, 1], [], []>} : vector<64x128xbf16>, vector<128x128xbf16>, vector<64x128xf32> -> vector<64x128xf32>
    %23 = vector.broadcast %9 : vector<1x128xf32> to vector<64x128xf32>
    %24 = arith.addf %22, %23 : vector<64x128xf32>
    %25 = vector.extract_strided_slice %24 {offsets = [0, 0], sizes = [64, 4], strides = [1, 1]} : vector<64x128xf32> to vector<64x4xf32>
    %26 = math.tanh %25 : vector<64x4xf32>
    %c0_12 = arith.constant 0 : index
    %c0_13 = arith.constant 0 : index
    %27 = vector.load %arg3[%c0_12, %c0_13] : memref<64x4xf32, #tpu.memory_space<vmem>>, vector<64x4xf32>
    tpu.vector_store %arg3[%c0_12, %c0_13], %26 {strides = array<i32>} : memref<64x4xf32, #tpu.memory_space<vmem>>, vector<64x4xf32>,
    return
  }
  func.func @transform_0(%arg0: i32) -> (i32, i32) {
    %c0_i32 = arith.constant 0 : i32
    %c0_i32_0 = arith.constant 0 : i32
    return %arg0, %c0_i32 : i32, i32
  }
  func.func @transform_1(%arg0: i32) -> (i32, i32) {
    %c0_i32 = arith.constant 0 : i32
    %c0_i32_0 = arith.constant 0 : i32
    %c0_i32_1 = arith.constant 0 : i32
    return %c0_i32, %c0_i32_0 : i32, i32
  }
  func.func @transform_2(%arg0: i32) -> (i32, i32) {
    %c0_i32 = arith.constant 0 : i32
    %c0_i32_0 = arith.constant 0 : i32
    return %arg0, %c0_i32 : i32, i32
  }
}

</mosaic_0001>

<bundles_post_ra>
// kernel: tpu_custom_call.1
= control target key start
LH: loop header
LB: loop body
LE: loop exit
PB: predicated region body
PF: predicated region fallthrough
CT: control target
= control target key end

     0   :  { %7 = vsyncpa [#allocation3], 0  ;;  %s515_s12 = smov [#allocation2]   ;;  %s516_s14 = smov 64   ;;  %s584_s0 = inlined_call_operand.vmem [shape: bf16[64,16], index: 0, kind: input, shape index: {}]   ;;  %s585_s1 = inlined_call_operand.hbm [shape: bf16[288,128], index: 1, kind: input, shape index: {}]   ;;  %s586_s2 = inlined_call_operand.vmem [shape: f32[64,4], index: 2, kind: output, shape index: {}]  }
   0x1   :  { %s14_s11 = sshll.u32 %s585_s1, 4  ;;  %s16_s13 = sshll.u32 %s515_s12, 4  ;;  %s15_s11 = int_to_ptr.hbm [resolvable:$true] %s14_s11  ;;  %s17_s13 = int_to_ptr.vmem [resolvable:$true] %s16_s13 }
   0x2   :  { %s517_s15 = smov 4  }
   0x3   :  { %22 = dma.hbm_to_vmem [thread:$0]  %s15_s11, 2304, %s17_s13, [#allocation3], %s516_s14, %s516_s14, %s517_s15  }
   0x4   :  { %513 = dma.done.wait [#allocation3], 2304  }
   0x5   :  { %514 = vsyncadd [#allocation3], 4294964992  ;;  %v437_v0 = vld [vmem:[#allocation2] sm:$0xff]  ;;  %vm101_vm0 = vcmask 130048   ;;  %v434_v2 = vld [vmem:[%s584_s0 + $0x8] sm:$0xff]  ;;  %vm331_vm1 = vcmask 31744  }
   0x6   :  { %v433_v1 = vld [vmem:[%s584_s0] sm:$0xff]  ;;  %121 = vmatpush.bf16.msra.mxu0 %v437_v0  ;;  %v444_v4 = vld [vmem:[#allocation2 + $0x38] sm:$0xff]  ;;  %v443_v5 = vld [vmem:[#allocation2 + $0x30] sm:$0xff] }
   0x7   :  { %v445_v3 = vld [vmem:[#allocation2 + $0x40] sm:$0xff]  ;;  %v442_v6 = vld [vmem:[#allocation2 + $0x28] sm:$0xff]  ;;  %v435_v7 = vld [vmem:[%s584_s0 + $0x10] sm:$0xff] }
   0x8   :  { %204 = vmatpush.bf16.msra.mxu1 %v445_v3  ;;  %454 = vmatpush.bf16.msra.mxu3 %v445_v3  ;;  %v436_v8 = vld [vmem:[%s584_s0 + $0x18] sm:$0xff]  ;;  %v441_v9 = vld [vmem:[#allocation2 + $0x20] sm:$0xff]  ;;  %v439_v11 = vld [vmem:[#allocation2 + $0x10] sm:$0xff] }
   0x9   :  { %365 = vmatmul.msk.bf16.vlgmr.msra.gmra.mxu0 %vm101_vm0, %v433_v1  ;;  %v440_v10 = vld [vmem:[#allocation2 + $0x18] sm:$0xff]  ;;  %v438_v12 = vld [vmem:[#allocation2 + $0x8] sm:$0xff]  ;;  %v453_v30 = vld [vmem:[#allocation2 + $0x80] sm:$0xff] }
   0xa   :  { %v70_v13 = vld [vmem:[#allocation2 + $0x88] sm:$0x1]  ;;  %v452_v32 = vld [vmem:[#allocation2 + $0x78] sm:$0xff]  ;;  %462 = vmatpush.bf16.msra.mxu2 %v453_v30  ;;  %v451_v33 = vld [vmem:[#allocation2 + $0x70] sm:$0xff] }
   0xb   :  { %v71_v14 = vunpack.c.l.bf16 %v70_v13  ;;  %v450_v37 = vld [vmem:[#allocation2 + $0x68] sm:$0xff]  ;;  %v449_v48 = vld [vmem:[#allocation2 + $0x60] sm:$0xff]  ;;  %v448_v49 = vld [vmem:[#allocation2 + $0x58] sm:$0xff] }
   0xc   :  { %205 = vmatpush.bf16.msra.mxu1 %v444_v4  ;;  %455 = vmatpush.bf16.msra.mxu3 %v444_v4  ;;  %v447_v50 = vld [vmem:[#allocation2 + $0x50] sm:$0xff]  ;;  %v446_v51 = vld [vmem:[#allocation2 + $0x48] sm:$0xff] }
   0xd   :  { %v74_v16 = vperm.slane %v71_v14, 0  ;;  %v155_v53 = vperm.slane %v71_v14, 1 }
   0xe   :  { %463 = vmatpush.bf16.msra.mxu2 %v452_v32 }
  0x10   :  { %206 = vmatpush.bf16.msra.mxu1 %v443_v5  ;;  %456 = vmatpush.bf16.msra.mxu3 %v443_v5 }
  0x12   :  { %464 = vmatpush.bf16.msra.mxu2 %v451_v33 }
  0x14   :  { %207 = vmatpush.bf16.msra.mxu1 %v442_v6  ;;  %457 = vmatpush.bf16.msra.mxu3 %v442_v6 }
  0x16   :  { %465 = vmatpush.bf16.msra.mxu2 %v450_v37 }
  0x18   :  { %208 = vmatpush.bf16.msra.mxu1 %v441_v9  ;;  %458 = vmatpush.bf16.msra.mxu3 %v441_v9 }
  0x19   :  { %366 = vmatmul.msk.bf16.gmra.mxu0 %vm101_vm0, %v434_v2 }
  0x1a   :  { %466 = vmatpush.bf16.msra.mxu2 %v449_v48 }
  0x1c   :  { %209 = vmatpush.bf16.msra.mxu1 %v440_v10  ;;  %459 = vmatpush.bf16.msra.mxu3 %v440_v10 }
  0x1e   :  { %467 = vmatpush.bf16.msra.mxu2 %v448_v49 }
  0x20   :  { %210 = vmatpush.bf16.msra.mxu1 %v439_v11  ;;  %460 = vmatpush.bf16.msra.mxu3 %v439_v11 }
  0x22   :  { %468 = vmatpush.bf16.msra.mxu2 %v447_v50 }
  0x24   :  { %211 = vmatpush.bf16.msra.mxu1 %v438_v12  ;;  %461 = vmatpush.bf16.msra.mxu3 %v438_v12 }
  0x26   :  { %469 = vmatpush.bf16.msra.mxu2 %v446_v51 }
  0x28   :  { %294 = vmatpush.bf16.msrb.mxu1 %v453_v30 }
  0x29   :  { %367 = vmatmul.msk.bf16.gmra.mxu0 %vm101_vm0, %v435_v7 }
  0x2c   :  { %295 = vmatpush.bf16.msrb.mxu1 %v452_v32 }
  0x30   :  { %296 = vmatpush.bf16.msrb.mxu1 %v451_v33 }
  0x34   :  { %297 = vmatpush.bf16.msrb.mxu1 %v450_v37 }
  0x38   :  { %298 = vmatpush.bf16.msrb.mxu1 %v449_v48 }
  0x39   :  { %368 = vmatmul.msk.bf16.gmra.mxu0 %vm101_vm0, %v436_v8 }
  0x3c   :  { %299 = vmatpush.bf16.msrb.mxu1 %v448_v49 }
  0x40   :  { %300 = vmatpush.bf16.msrb.mxu1 %v447_v50 }
  0x44   :  { %301 = vmatpush.bf16.msrb.mxu1 %v446_v51 }
  0x86   :  { %v123_v15 = vpop.f32.mrf.mxu0 }
  0x87   :  { %v124_v17 = vadd.f32 %v123_v15, %v74_v16 }
  0x89   :  { %v143_v20 = vmax.f32 %v124_v17, 0.0  ;;  %v72_v17 = vld [vmem:[#allocation2 + $0x88] sm:$0x2] }
  0x8e   :  { %v125_v18 = vpop.f32.mrf.mxu0 }
  0x8f   :  { %v126_v19 = vadd.f32 %v125_v18, %v74_v16  ;;  %v73_v18 = vunpack.c.l.bf16 %v72_v17 }
  0x91   :  { %v144_v21 = vmax.f32 %v126_v19, 0.0  ;;  %v245_v19 = vperm.slane %v73_v18, 2 }
  0x93   :  { %v151_v22 = vpack.c.bf16 %v144_v21, %v143_v20 }
  0x95   :  { %212 = vmatmul.bf16.vlgmr.msra.gmra.mxu1 %v151_v22 }
  0x96   :  { %v128_v23 = vpop.f32.mrf.mxu0 }
  0x97   :  { %v129_v24 = vadd.f32 %v128_v23, %v74_v16 }
  0x99   :  { %v145_v27 = vmax.f32 %v129_v24, 0.0 }
  0x9e   :  { %v130_v25 = vpop.f32.mrf.mxu0 }
  0x9f   :  { %v131_v26 = vadd.f32 %v130_v25, %v74_v16 }
  0xa1   :  { %v146_v28 = vmax.f32 %v131_v26, 0.0 }
  0xa3   :  { %v152_v29 = vpack.c.bf16 %v146_v28, %v145_v27 }
  0xa5   :  { %217 = vmatmul.bf16.vlgmr.msra.gmra.mxu3 %v152_v29 }
  0xa6   :  { %v133_v31 = vpop.f32.mrf.mxu0 }
  0xa7   :  { %v134_v34 = vadd.f32 %v133_v31, %v74_v16 }
  0xa9   :  { %v147_v38 = vmax.f32 %v134_v34, 0.0 }
  0xae   :  { %v135_v35 = vpop.f32.mrf.mxu0 }
  0xaf   :  { %v136_v36 = vadd.f32 %v135_v35, %v74_v16 }
  0xb1   :  { %v148_v39 = vmax.f32 %v136_v36, 0.0 }
  0xb3   :  { %v153_v40 = vpack.c.bf16 %v148_v39, %v147_v38 }
  0xb5   :  { %222 = vmatmul.bf16.gmra.mxu3 %v153_v40 }
  0xb6   :  { %v138_v41 = vpop.f32.mrf.mxu0 }
  0xb7   :  { %v139_v42 = vadd.f32 %v138_v41, %v74_v16 }
  0xb9   :  { %v149_v45 = vmax.f32 %v139_v42, 0.0 }
  0xbe   :  { %v140_v43 = vpop.f32.mrf.mxu0 }
  0xbf   :  { %v141_v44 = vadd.f32 %v140_v43, %v74_v16 }
  0xc1   :  { %v150_v46 = vmax.f32 %v141_v44, 0.0 }
  0xc3   :  { %v154_v47 = vpack.c.bf16 %v150_v46, %v149_v45 }
  0xc5   :  { %227 = vmatmul.bf16.gmra.mxu3 %v154_v47 }
 0x112   :  { %v213_v52 = vpop.f32.mrf.mxu1 }
 0x113   :  { %v214_v54 = vadd.f32 %v213_v52, %v155_v53 }
 0x115   :  { %v233_v57 = vmax.f32 %v214_v54, 0.0 }
 0x11a   :  { %v215_v55 = vpop.f32.mrf.mxu1 }
 0x11b   :  { %v216_v56 = vadd.f32 %v215_v55, %v155_v53 }
 0x11d   :  { %v234_v58 = vmax.f32 %v216_v56, 0.0 }
 0x11f   :  { %v241_v59 = vpack.c.bf16 %v234_v58, %v233_v57 }
 0x121   :  { %302 = vmatmul.bf16.vlgmr.msrb.gmra.mxu1 %v241_v59 }
 0x128   :  { %v218_v60 = vpop.f32.mrf.mxu3 }
 0x129   :  { %v219_v61 = vadd.f32 %v218_v60, %v155_v53 }
 0x12b   :  { %v235_v0 = vmax.f32 %v219_v61, 0.0 }
 0x130   :  { %v220_v62 = vpop.f32.mrf.mxu3 }
 0x131   :  { %v221_v63 = vadd.f32 %v220_v62, %v155_v53 }
 0x133   :  { %v236_v1 = vmax.f32 %v221_v63, 0.0 }
 0x135   :  { %v242_v2 = vpack.c.bf16 %v236_v1, %v235_v0 }
 0x137   :  { %307 = vmatmul.bf16.vlgmr.msra.gmra.mxu2 %v242_v2 }
 0x138   :  { %v223_v3 = vpop.f32.mrf.mxu3 }
 0x139   :  { %v224_v4 = vadd.f32 %v223_v3, %v155_v53 }
 0x13b   :  { %v237_v7 = vmax.f32 %v224_v4, 0.0 }
 0x140   :  { %v225_v5 = vpop.f32.mrf.mxu3 }
 0x141   :  { %v226_v6 = vadd.f32 %v225_v5, %v155_v53 }
 0x143   :  { %v238_v8 = vmax.f32 %v226_v6, 0.0 }
 0x145   :  { %v243_v9 = vpack.c.bf16 %v238_v8, %v237_v7 }
 0x147   :  { %312 = vmatmul.bf16.gmra.mxu2 %v243_v9 }
 0x148   :  { %v228_v10 = vpop.f32.mrf.mxu3 }
 0x149   :  { %v229_v11 = vadd.f32 %v228_v10, %v155_v53 }
 0x14b   :  { %v239_v14 = vmax.f32 %v229_v11, 0.0 }
 0x150   :  { %v230_v12 = vpop.f32.mrf.mxu3 }
 0x151   :  { %v231_v13 = vadd.f32 %v230_v12, %v155_v53 }
 0x153   :  { %v240_v15 = vmax.f32 %v231_v13, 0.0 }
 0x155   :  { %v244_v16 = vpack.c.bf16 %v240_v15, %v239_v14 }
 0x157   :  { %317 = vmatmul.bf16.gmra.mxu2 %v244_v16 }
 0x19e   :  { %v303_v20 = vpop.f32.mrf.mxu1 }
 0x19f   :  { %v304_v21 = vadd.f32 %v303_v20, %v245_v19 }
 0x1a1   :  { %473 = vtanh.f32 %v304_v21 }
 0x1a6   :  { %v305_v22 = vpop.f32.mrf.mxu1 }
 0x1a7   :  { %v474_v23 = vpop.eup %473  ;;  %v306_v24 = vadd.f32 %v305_v22, %v245_v19 }
 0x1a8   :  { %332 = vst.msk [vmem:[%s586_s2] sm:$0xff] %vm331_vm1, %v474_v23 }
 0x1a9   :  { %475 = vtanh.f32 %v306_v24 }
 0x1af   :  { %v476_v25 = vpop.eup %475 }
 0x1b0   :  { %333 = vst.msk [vmem:[%s586_s2 + $0x8] sm:$0xff] %vm331_vm1, %v476_v25 }
 0x1ba   :  { %v308_v26 = vpop.f32.mrf.mxu2 }
 0x1bb   :  { %v309_v27 = vadd.f32 %v308_v26, %v245_v19 }
 0x1bd   :  { %477 = vtanh.f32 %v309_v27 }
 0x1c2   :  { %v310_v28 = vpop.f32.mrf.mxu2 }
 0x1c3   :  { %v478_v29 = vpop.eup %477  ;;  %v311_v30 = vadd.f32 %v310_v28, %v245_v19 }
 0x1c4   :  { %334 = vst.msk [vmem:[%s586_s2 + $0x10] sm:$0xff] %vm331_vm1, %v478_v29 }
 0x1c5   :  { %479 = vtanh.f32 %v311_v30 }
 0x1ca   :  { %v313_v31 = vpop.f32.mrf.mxu2 }
 0x1cb   :  { %v480_v32 = vpop.eup %479  ;;  %v314_v33 = vadd.f32 %v313_v31, %v245_v19 }
 0x1cc   :  { %335 = vst.msk [vmem:[%s586_s2 + $0x18] sm:$0xff] %vm331_vm1, %v480_v32 }
 0x1cd   :  { %481 = vtanh.f32 %v314_v33 }
 0x1d2   :  { %v315_v34 = vpop.f32.mrf.mxu2 }
 0x1d3   :  { %v482_v35 = vpop.eup %481  ;;  %v316_v36 = vadd.f32 %v315_v34, %v245_v19 }
 0x1d4   :  { %336 = vst.msk [vmem:[%s586_s2 + $0x20] sm:$0xff] %vm331_vm1, %v482_v35 }
 0x1d5   :  { %483 = vtanh.f32 %v316_v36 }
 0x1da   :  { %v318_v37 = vpop.f32.mrf.mxu2 }
 0x1db   :  { %v484_v38 = vpop.eup %483  ;;  %v319_v39 = vadd.f32 %v318_v37, %v245_v19 }
 0x1dc   :  { %337 = vst.msk [vmem:[%s586_s2 + $0x28] sm:$0xff] %vm331_vm1, %v484_v38 }
 0x1dd   :  { %485 = vtanh.f32 %v319_v39 }
 0x1e2   :  { %v320_v40 = vpop.f32.mrf.mxu2 }
 0x1e3   :  { %v486_v41 = vpop.eup %485  ;;  %v321_v42 = vadd.f32 %v320_v40, %v245_v19 }
 0x1e4   :  { %338 = vst.msk [vmem:[%s586_s2 + $0x30] sm:$0xff] %vm331_vm1, %v486_v41 }
 0x1e5   :  { %487 = vtanh.f32 %v321_v42 }
 0x1eb   :  { %v488_v43 = vpop.eup %487 }
 0x1ec   :  { %339 = vst.msk [vmem:[%s586_s2 + $0x38] sm:$0xff] %vm331_vm1, %v488_v43 }
 0x1ed   :  { %344 = vsyncpa [#allocation3], 1 }

</bundles_post_ra>
